<compile_context>
chip_gen: v5e
topology: v5e:2x2
jax: 0.10.0
libtpu: 0.0.40
codegen_flags: <defaults>
</compile_context>

<pallas_src>
import functools

import jax
import jax.numpy as jnp
from jax import lax
from jax.experimental import pallas as pl
from jax.experimental.pallas import tpu as pltpu


def _round_up(x, m):
    return ((x + m - 1) // m) * m


# ---------------------------------------------------------------------------
# Kernel
# ---------------------------------------------------------------------------
def _labeler_kernel(x_ref, w1_ref, w2_ref, w3_ref, o_ref):
    """One batch tile of the Labeler MLP, computed in transposed orientation.

    x_ref : (TB, Fb)   input rows (Fb >= feedback_num; W1 is zero-padded to Fb
                       so no in-kernel lane sub-slice is needed)
    w1_ref: (D, Fb)    torch nn.Linear (out, in) layout, zero-padded columns
    w2_ref: (D, D)
    w3_ref: (1, D)
    o_ref : (1, 1, TB) lane-dense sigmoid outputs for this tile
    """
    xs = x_ref[...].astype(jnp.float32)            # in-kernel upcast (bf16 ok)

    # h1^T = W1 @ xs^T -> (D, TB): contraction on the minor (lane) dim of both
    # operands — the standard q·kᵀ-style transposed-RHS matmul handled natively
    # by the MXU latch path (no XLU transpose of the large (TB, Fb) tile).
    h1t = lax.dot_general(w1_ref[...], xs, (((1,), (1,)), ((), ())),
                          preferred_element_type=jnp.float32)
    h1t = jnp.maximum(h1t, 0.0)

    # h2^T = W2 @ h1^T -> (D, TB): canonical (M,K)x(K,N) MXU form.
    h2t = jnp.maximum(
        jnp.dot(w2_ref[...], h1t, preferred_element_type=jnp.float32), 0.0)

    # logit^T = w3 @ h2^T -> (1, TB): TB on the lane axis => lane-dense stores.
    logit_t = jnp.dot(w3_ref[...], h2t, preferred_element_type=jnp.float32)
    o_ref[...] = jax.nn.sigmoid(logit_t).reshape(o_ref.shape)


# ---------------------------------------------------------------------------
# Tiling policy
# ---------------------------------------------------------------------------
_MAX_TB = 8192                       # review: 4096-8192 rows per tile
_MIN_SPLIT_B = 256                   # below this, one tile beats two grid steps
_VMEM_LIMIT_BYTES = 32 * 1024 * 1024     # explicit scoped-VMEM budget (all gens)
_X_VMEM_BUDGET = 12 * 1024 * 1024        # double-buffered, lane-padded x tiles


def _pick_batch_tile(B, itemsize):
    """Rows per batch tile.

    Big tiles amortize the ~0.35 us per-grid-step overhead; >= 2 (even) blocks
    for medium/large batches keep both v7x TensorCores busy; the cap keeps the
    double-buffered, lane-padded-to-128 x tile inside the VMEM budget (v5e's
    default scoped VMEM is only 16 MiB)."""
    cap = _X_VMEM_BUDGET // (2 * 128 * itemsize)
    max_tb = max(128, min(_MAX_TB, (cap // 128) * 128))
    if B <= _MIN_SPLIT_B:
        return B                      # single tile; full batch dim is always legal
    n_blocks = max(2, pl.cdiv(B, max_tb))
    if n_blocks % 2:                  # odd block counts -> 33-50% TC imbalance on v7x
        n_blocks += 1
    return min(max_tb, _round_up(pl.cdiv(B, n_blocks), 128))


# ---------------------------------------------------------------------------
# Parameter prep (one-time, outside the per-call hot path)
# ---------------------------------------------------------------------------
def prepare_params(w1, w2, w3, total_feature_cols=None):
    """One-time dtype cast and (optional) zero-padding of W1 to the total
    number of input columns, so no per-call weight reshuffling is needed.
    Torch (out, in) layout is kept — the kernel consumes it directly."""
    w1 = jnp.asarray(w1, jnp.float32)
    if total_feature_cols is not None and total_feature_cols > w1.shape[1]:
        w1 = jnp.pad(w1, ((0, 0), (0, total_feature_cols - w1.shape[1])))
    return w1, jnp.asarray(w2, jnp.float32), jnp.asarray(w3, jnp.float32)


# ---------------------------------------------------------------------------
# Forward
# ---------------------------------------------------------------------------
@functools.partial(jax.jit, static_argnames=("feedback_num",))
def labeler_forward(x, w1, w2, w3, *, feedback_num):
    """Labeler forward: sigmoid(relu(relu(x[:, :F] @ W1^T) @ W2^T) @ W3^T).

    x : (B, >=feedback_num), any float dtype (bf16 accepted at the HBM
        boundary; the upcast happens in-kernel, so no extra wrapper pass).
    w1: (D, feedback_num) or (D, F_full) with zero-padded extra columns
        (torch (out, in) layout — see prepare_params); w2: (D, D); w3: (1, D).
    Returns (B, 1) float32.
    """
    B, F_full = x.shape
    F = int(feedback_num)
    assert F_full >= F, (F_full, F)
    D = w2.shape[0]

    # Only the first block_F columns of x are ever read from HBM.
    block_F = F_full if F_full <= 128 else min(F_full, _round_up(F, 128))

    # Zero-pad W1 to the x block width so the kernel needs no lane sub-slice.
    # NOTE: columns F..block_F of x are multiplied by zero weights — exact for
    # finite inputs (matches the torch module, which slices them off first).
    w1 = w1.astype(jnp.float32)
    if w1.shape[1] != block_F:
        w1 = jnp.zeros((D, block_F), jnp.float32).at[:, :F].set(w1[:, :F])
    w2 = w2.astype(jnp.float32)
    w3 = w3.astype(jnp.float32)

    TB = _pick_batch_tile(B, x.dtype.itemsize)
    n_blocks = pl.cdiv(B, TB)

    flops = 2 * B * (F * D + D * D + D)
    bytes_accessed = (n_blocks * TB * block_F * x.dtype.itemsize
                      + (D * block_F + D * D + D) * 4
                      + n_blocks * TB * 4)

    out = pl.pallas_call(
        _labeler_kernel,
        out_shape=jax.ShapeDtypeStruct((n_blocks, 1, TB), jnp.float32),
        grid=(n_blocks,),
        in_specs=[
            # activations: tiled over batch, double-buffered by Pallas
            pl.BlockSpec((TB, block_F), lambda i: (i, 0)),
            # weights: constant block index -> stay VMEM-resident across grid
            pl.BlockSpec((D, block_F), lambda i: (0, 0)),
            pl.BlockSpec((D, D), lambda i: (0, 0)),
            pl.BlockSpec((1, D), lambda i: (0, 0)),
        ],
        out_specs=pl.BlockSpec((1, 1, TB), lambda i: (i, 0, 0)),
        compiler_params=pltpu.CompilerParams(
            dimension_semantics=("parallel",),       # shards batch over v7x TCs
            vmem_limit_bytes=_VMEM_LIMIT_BYTES),
        cost_estimate=pl.CostEstimate(
            flops=flops, transcendentals=B, bytes_accessed=bytes_accessed),
    )(x, w1, w2, w3)

    # NOTE(ragged tail): padded rows of the last tile are computed from
    # unspecified VMEM and may hold NaN/Inf in out[..., B:]; they are sliced
    # off here — never consume the raw (n_blocks, 1, TB) slab directly.
    return out.reshape(n_blocks * TB)[:B].reshape(B, 1)


def init_params(key, feedback_num, dim_num):
    """Deterministic synthetic weights, torch Linear shape convention (out, in)."""
    k1, k2, k3 = jax.random.split(key, 3)
    b1 = 1.0 / jnp.sqrt(feedback_num)
    b2 = 1.0 / jnp.sqrt(dim_num)
    w1 = jax.random.uniform(k1, (dim_num, feedback_num), jnp.float32, -b1, b1)
    w2 = jax.random.uniform(k2, (dim_num, dim_num), jnp.float32, -b2, b2)
    w3 = jax.random.uniform(k3, (1, dim_num), jnp.float32, -b2, b2)
    return w1, w2, w3


if __name__ == "__main__":
    feedback_num = 16
    dim_num = 32
    batch = 8
    extra_cols = 8   # module slices x[:, :feedback_num], so give it extra cols

    key = jax.random.PRNGKey(0)
    kx, kw, kx2 = jax.random.split(key, 3)
    x = jax.random.normal(kx, (batch, feedback_num + extra_cols), jnp.float32)
    w1, w2, w3 = prepare_params(*init_params(kw, feedback_num, dim_num),
                                total_feature_cols=feedback_num + extra_cols)

    def ref_fn(xf):
        xs = xf[:, :feedback_num].astype(jnp.float32)
        w1u = w1[:, :feedback_num]
        return jax.nn.sigmoid(
            jnp.maximum(jnp.maximum(xs @ w1u.T, 0.0) @ w2.T, 0.0) @ w3.T)

    # small-shape check (single tile)
    out = jax.block_until_ready(
        labeler_forward(x, w1, w2, w3, feedback_num=feedback_num))
    ref = ref_fn(x)
    assert out.shape == (batch, 1)
    assert jnp.allclose(out, ref, atol=1e-4, rtol=1e-4), \
        float(jnp.max(jnp.abs(out - ref)))

    # multi-tile + ragged-tail check (exercises the >=2-block v7x split)
    big_batch = 2100
    x2 = jax.random.normal(kx2, (big_batch, feedback_num + extra_cols),
                           jnp.float32)
    out2 = jax.block_until_ready(
        labeler_forward(x2, w1, w2, w3, feedback_num=feedback_num))
    ref2 = ref_fn(x2)
    assert out2.shape == (big_batch, 1)
    assert jnp.allclose(out2, ref2, atol=1e-4, rtol=1e-4), \
        float(jnp.max(jnp.abs(out2 - ref2)))

    # bf16-at-the-HBM-boundary check: the kernel upcasts in VMEM, no wrapper cast
    x2_bf16 = x2.astype(jnp.bfloat16)
    out3 = jax.block_until_ready(
        labeler_forward(x2_bf16, w1, w2, w3, feedback_num=feedback_num))
    ref3 = ref_fn(x2_bf16)   # reference consumes the same bf16-rounded values
    assert jnp.allclose(out3, ref3, atol=1e-4, rtol=1e-4), \
        float(jnp.max(jnp.abs(out3 - ref3)))

    print("KERNEL_OK")
</pallas_src>

<mosaic_0001>
module attributes {stable_mosaic.version = 11 : i64} {
  func.func @_labeler_kernel(%arg0: i32, %arg1: memref<8x24xf32, #tpu.memory_space<vmem>>, %arg2: memref<32x24xf32, #tpu.memory_space<vmem>>, %arg3: memref<32x32xf32, #tpu.memory_space<vmem>>, %arg4: memref<1x32xf32, #tpu.memory_space<vmem>>, %arg5: memref<1x1x8xf32, #tpu.memory_space<vmem>>) attributes {dimension_semantics = [#tpu.dimension_semantics<parallel>], iteration_bounds = array<i64: 1>, scalar_prefetch = 0 : i64, scratch_operands = 0 : i64, tpu.core_type = #tpu.core_type<tc>, window_params = [{transform_indices = @transform_0, window_bounds = array<i64: 8, 24>}, {pipeline_mode = #tpu.pipeline_mode<synchronous>, transform_indices = @transform_1, window_bounds = array<i64: 32, 24>}, {pipeline_mode = #tpu.pipeline_mode<synchronous>, transform_indices = @transform_2, window_bounds = array<i64: 32, 32>}, {pipeline_mode = #tpu.pipeline_mode<synchronous>, transform_indices = @transform_3, window_bounds = array<i64: 1, 32>}, {transform_indices = @transform_4, window_bounds = array<i64: 1, 1, 8>}]} {
    %c0 = arith.constant 0 : index
    %c0_0 = arith.constant 0 : index
    %0 = vector.load %arg1[%c0, %c0_0] : memref<8x24xf32, #tpu.memory_space<vmem>>, vector<8x24xf32>
    %c0_1 = arith.constant 0 : index
    %c0_2 = arith.constant 0 : index
    %1 = vector.load %arg2[%c0_1, %c0_2] : memref<32x24xf32, #tpu.memory_space<vmem>>, vector<32x24xf32>
    %cst = arith.constant dense<0.000000e+00> : vector<32x8xf32>
    %2 = tpu.matmul %1, %0, %cst {dimension_numbers = #tpu.dot_dimension_numbers<[1], [1], [0], [0], [0, 0, 1, 0], [], []>} : vector<32x24xf32>, vector<8x24xf32>, vector<32x8xf32> -> vector<32x8xf32>
    %cst_3 = arith.constant 0.000000e+00 : f32
    %3 = vector.broadcast %cst_3 : f32 to vector<32x8xf32>
    %4 = arith.maximumf %2, %3 : vector<32x8xf32>
    %c0_4 = arith.constant 0 : index
    %c0_5 = arith.constant 0 : index
    %5 = vector.load %arg3[%c0_4, %c0_5] : memref<32x32xf32, #tpu.memory_space<vmem>>, vector<32x32xf32>
    %cst_6 = arith.constant dense<0.000000e+00> : vector<32x8xf32>
    %6 = tpu.matmul %5, %4, %cst_6 {dimension_numbers = #tpu.dot_dimension_numbers<[1], [0], [0], [1], [0, 0, 1, 1], [], []>} : vector<32x32xf32>, vector<32x8xf32>, vector<32x8xf32> -> vector<32x8xf32>
    %cst_7 = arith.constant 0.000000e+00 : f32
    %7 = vector.broadcast %cst_7 : f32 to vector<32x8xf32>
    %8 = arith.maximumf %6, %7 : vector<32x8xf32>
    %c0_8 = arith.constant 0 : index
    %c0_9 = arith.constant 0 : index
    %9 = vector.load %arg4[%c0_8, %c0_9] : memref<1x32xf32, #tpu.memory_space<vmem>>, vector<1x32xf32>
    %cst_10 = arith.constant dense<0.000000e+00> : vector<1x8xf32>
    %10 = tpu.matmul %9, %8, %cst_10 {dimension_numbers = #tpu.dot_dimension_numbers<[1], [0], [0], [1], [0, 0, 1, 1], [], []>} : vector<1x32xf32>, vector<32x8xf32>, vector<1x8xf32> -> vector<1x8xf32>
    %11 = arith.negf %10 : vector<1x8xf32>
    %12 = math.exp %11 : vector<1x8xf32>
    %cst_11 = arith.constant 1.000000e+00 : f32
    %13 = vector.broadcast %cst_11 : f32 to vector<1x8xf32>
    %14 = arith.addf %13, %12 : vector<1x8xf32>
    %15 = arith.divf %13, %14 : vector<1x8xf32>
    %16 = vector.shape_cast %15 : vector<1x8xf32> to vector<1x1x8xf32>
    %c0_12 = arith.constant 0 : index
    %c0_13 = arith.constant 0 : index
    %c0_14 = arith.constant 0 : index
    %17 = vector.load %arg5[%c0_12, %c0_13, %c0_14] : memref<1x1x8xf32, #tpu.memory_space<vmem>>, vector<1x1x8xf32>
    tpu.vector_store %arg5[%c0_12, %c0_13, %c0_14], %16 {strides = array<i32>} : memref<1x1x8xf32, #tpu.memory_space<vmem>>, vector<1x1x8xf32>,
    return
  }
  func.func @transform_0(%arg0: i32) -> (i32, i32) {
    %c0_i32 = arith.constant 0 : i32
    %c0_i32_0 = arith.constant 0 : i32
    return %arg0, %c0_i32 : i32, i32
  }
  func.func @transform_1(%arg0: i32) -> (i32, i32) {
    %c0_i32 = arith.constant 0 : i32
    %c0_i32_0 = arith.constant 0 : i32
    %c0_i32_1 = arith.constant 0 : i32
    return %c0_i32, %c0_i32_0 : i32, i32
  }
  func.func @transform_2(%arg0: i32) -> (i32, i32) {
    %c0_i32 = arith.constant 0 : i32
    %c0_i32_0 = arith.constant 0 : i32
    %c0_i32_1 = arith.constant 0 : i32
    return %c0_i32, %c0_i32_0 : i32, i32
  }
  func.func @transform_3(%arg0: i32) -> (i32, i32) {
    %c0_i32 = arith.constant 0 : i32
    %c0_i32_0 = arith.constant 0 : i32
    %c0_i32_1 = arith.constant 0 : i32
    return %c0_i32, %c0_i32_0 : i32, i32
  }
  func.func @transform_4(%arg0: i32) -> (i32, i32, i32) {
    %c0_i32 = arith.constant 0 : i32
    %c0_i32_0 = arith.constant 0 : i32
    %c0_i32_1 = arith.constant 0 : i32
    return %arg0, %c0_i32, %c0_i32_0 : i32, i32, i32
  }
}

</mosaic_0001>

<bundles_post_ra>
// kernel: labeler_forward.1
= control target key start
LH: loop header
LB: loop body
LE: loop exit
PB: predicated region body
PF: predicated region fallthrough
CT: control target
= control target key end

     0   :  { %vm23_vm0 = vcmask 195584   ;;  %s298_s0 = inlined_call_operand.vmem [shape: f32[8,24], index: 0, kind: input, shape index: {}]   ;;  %s299_s1 = inlined_call_operand.vmem [shape: f32[32,24], index: 1, kind: input, shape index: {}]   ;;  %s300_s2 = inlined_call_operand.vmem [shape: f32[32,32], index: 2, kind: input, shape index: {}]   ;;  %s301_s3 = inlined_call_operand.vmem [shape: f32[1,32], index: 3, kind: input, shape index: {}]   ;;  %s302_s4 = inlined_call_operand.hbm [shape: f32[1,1,8], index: 4, kind: output, shape index: {}]  }
   0x1   :  { %v18_v0 = vld [vmem:[%s298_s0] sm:$0xff]  ;;  %v22_v2 = vld [vmem:[%s299_s1 + $0x18] sm:$0xff] }
   0x2   :  { %183 = vmatpush.xpose.msk.msra.mxu0 %vm23_vm0, %v18_v0  ;;  %v19_v1 = vld [vmem:[%s299_s1] sm:$0xff]  ;;  %194 = vmatpush.xpose.msk.msra.mxu1 %vm23_vm0, %v18_v0 }
   0x3   :  { %9 = vsyncpa [#allocation3], 0  ;;  %v20_v3 = vld [vmem:[%s299_s1 + $0x8] sm:$0xff]  ;;  %v21_v4 = vld [vmem:[%s299_s1 + $0x10] sm:$0xff]  ;;  %vm76_vm1 = vcmask 261120   ;;  %s174_s9 = sshll.u32 %s302_s4, 4  ;;  %s175_s9 = int_to_ptr.hbm [resolvable:$true] %s174_s9 }
   0x4   :  { %v73_v13 = vld [vmem:[%s300_s2 + $0x8] sm:$0xff]  ;;  %v74_v14 = vld [vmem:[%s300_s2 + $0x10] sm:$0xff]  ;;  %v72_v15 = vld [vmem:[%s300_s2] sm:$0xff]  ;;  %vm165_vm5 = vcmask 57344  }
   0x5   :  { %184 = vmatmul.msk.f32.vlgmr.msra.gmra.mxu0 %vm23_vm0, %v19_v1  ;;  %187 = vmatmul.msk.f32.vlgmr.msra.gmra.mxu1 %vm23_vm0, %v22_v2  ;;  %v75_v16 = vld [vmem:[%s300_s2 + $0x18] sm:$0xff]  ;;  %v122_v25 = vld [vmem:[%s301_s3] sm:$0x1]  ;;  %s234_s2 = smov [#allocation2]  }
   0x6   :  { %s172_s7 = sshll.u32 %s234_s2, 4  ;;  %s173_s7 = int_to_ptr.vmem [resolvable:$true] %s172_s7 }
   0xd   :  { %185 = vmatmul.msk.f32.gmra.mxu0 %vm23_vm0, %v20_v3 }
  0x15   :  { %186 = vmatmul.msk.f32.gmra.mxu0 %vm23_vm0, %v21_v4 }
  0x82   :  { %v56_v5 = vpop.f32.mrf.mxu0  ;;  %v65_v6 = vpop.f32.mrf.mxu1 }
  0x83   :  { %v71_v7 = vmax.f32 %v65_v6, 0.0  ;;  %v68_v12 = vmax.f32 %v56_v5, 0.0 }
  0x85   :  { %101 = vmatpush.msrb.mxu1 %v71_v7  ;;  %195 = vmatpush.msra.mxu2 %v71_v7 }
  0x86   :  { %196 = vmatpush.msra.mxu3 %v71_v7 }
  0x8a   :  { %v59_v8 = vpop.f32.mrf.mxu0 }
  0x8b   :  { %v69_v11 = vmax.f32 %v59_v8, 0.0 }
  0x92   :  { %v62_v9 = vpop.f32.mrf.mxu0 }
  0x93   :  { %v70_v10 = vmax.f32 %v62_v9, 0.0 }
  0x95   :  { %102 = vmatpush.msrb.mxu1 %v70_v10  ;;  %197 = vmatpush.msra.mxu2 %v70_v10 }
  0x96   :  { %198 = vmatpush.msra.mxu3 %v70_v10 }
  0x97   :  { %103 = vmatpush.msrb.mxu1 %v69_v11  ;;  %199 = vmatpush.msra.mxu2 %v69_v11 }
  0x98   :  { %200 = vmatpush.msra.mxu3 %v69_v11 }
  0x99   :  { %104 = vmatpush.msrb.mxu1 %v68_v12  ;;  %201 = vmatpush.msra.mxu2 %v68_v12 }
  0x9a   :  { %202 = vmatpush.msra.mxu3 %v68_v12  ;;  %189 = vmatmul.msk.f32.vlgmr.msra.gmra.mxu2 %vm76_vm1, %v73_v13 }
  0x9b   :  { %190 = vmatmul.msk.f32.vlgmr.msra.gmra.mxu3 %vm76_vm1, %v74_v14  ;;  %188 = vmatmul.msk.f32.vlgmr.msrb.gmra.mxu1 %vm76_vm1, %v72_v15 }
  0xa3   :  { %191 = vmatmul.msk.f32.gmra.mxu3 %vm76_vm1, %v75_v16 }
 0x118   :  { %v106_v21 = vpop.f32.mrf.mxu1 }
 0x119   :  { %v118_v24 = vmax.f32 %v106_v21, 0.0 }
 0x11d   :  { %v109_v19 = vpop.f32.mrf.mxu2 }
 0x11e   :  { %v112_v17 = vpop.f32.mrf.mxu3  ;;  %v119_v23 = vmax.f32 %v109_v19, 0.0 }
 0x11f   :  { %v120_v22 = vmax.f32 %v112_v17, 0.0 }
 0x126   :  { %v115_v18 = vpop.f32.mrf.mxu3 }
 0x127   :  { %v121_v20 = vmax.f32 %v115_v18, 0.0 }
 0x129   :  { %138 = vmatpush.msrb.mxu2 %v121_v20 }
 0x12b   :  { %139 = vmatpush.msrb.mxu2 %v120_v22 }
 0x12d   :  { %140 = vmatpush.msrb.mxu2 %v119_v23 }
 0x12f   :  { %141 = vmatpush.msrb.mxu2 %v118_v24 }
 0x130   :  { %192 = vmatmul.msk.f32.vlgmr.msrb.gmra.mxu2 %vm76_vm1, %v122_v25 }
 0x1b3   :  { %v143_v26 = vpop.f32.mrf.mxu2 }
 0x1b4   :  { %v193_v27 = vmul.f32 -1.442695, %v143_v26 }
 0x1b6   :  { %204 = vpow2.f32 %v193_v27 }
 0x1bc   :  { %v205_v28 = vpop.eup %204 }
 0x1bd   :  { %v149_v29 = vadd.f32 1.0, %v205_v28 }
 0x1bf   :  { %206 = vrcp.f32 %v149_v29  ;;  %v161_v33 = vand.u32 2147483648, %v149_v29  ;;  %v159_v35 = vand.u32 2147483647, %v149_v29  ;;  %vm155_vm3 = vweird.f32 %v149_v29 }
 0x1c1   :  { %v162_v37 = vor.u32 1.1754944e-38, %v161_v33  ;;  %vm160_vm6 = vcmp.eq.f32.partialorder %v159_v35, 8.507059e+37 }
 0x1c5   :  { %v207_v30 = vpop.eup %206 }
 0x1c6   :  { %v151_v31 = vmul.f32 %v207_v30, %v149_v29  ;;  %vm156_vm2 = vweird.f32 %v207_v30 }
 0x1c7   :  { %vm157_vm4 = vmor %vm155_vm3, %vm156_vm2 }
 0x1c8   :  { %v152_v32 = vsub.f32 1.0, %v151_v31 }
 0x1ca   :  { %v153_v34 = vmul.f32 %v207_v30, %v152_v32 }
 0x1cc   :  { %v154_v36 = vadd.f32 %v207_v30, %v153_v34 }
 0x1ce   :  { %v158_v38 = vsel %vm157_vm4, %v207_v30, %v154_v36 }
 0x1cf   :  { %v163_v39 = vsel %vm160_vm6, %v162_v37, %v158_v38 }
 0x1d0   :  { %166 = vst.msk [vmem:[#allocation2] sm:$0x1] %vm165_vm5, %v163_v39 }
 0x1d1   :  { %177 = dma.vmem_to_hbm [thread:$0]  %s173_s7, 16, %s175_s9, [#allocation3]  }
 0x1d2   :  { %232 = dma.done.wait [#allocation3], 16  }
 0x1d3   :  { %233 = vsyncadd [#allocation3], 4294967280 }
 0x1d4   :  { %182 = vsyncpa [#allocation3], 1 }

</bundles_post_ra>
